<compile_context>
chip_gen: v7x
topology: tpu7x:2x2x1
jax: 0.10.0
libtpu: 0.0.40
codegen_flags: <defaults>
</compile_context>

<pallas_src>
import math
from functools import partial

import jax
import jax.numpy as jnp
from jax import lax
from jax.experimental import pallas as pl
from jax.experimental.pallas import tpu as pltpu

_INV_SQRT2 = 1.0 / math.sqrt(2.0)
_LN_EPS = 1e-6
# dot_general dimension numbers for q @ k^T contracting head_dim directly.
_NT_DIMS = (((1,), (1,)), ((), ()))


def _gelu_exact(x):
    # PyTorch nn.GELU() default = exact erf formulation.
    # (tanh-approx GELU would move work to the EUP but changes numerics.)
    return 0.5 * x * (1.0 + lax.erf(x * _INV_SQRT2))


def _layernorm(x, g, b):
    # Two-pass form, eps = 1e-6 (matches torch.nn.LayerNorm).
    mean = jnp.mean(x, axis=-1, keepdims=True)
    xc = x - mean
    var = jnp.mean(xc * xc, axis=-1, keepdims=True)
    return xc * lax.rsqrt(var + _LN_EPS) * g + b


# ---------------------------------------------------------------------------
# Fused Block kernel: one grid step per batch element.
# ---------------------------------------------------------------------------
def _block_kernel(x_ref, g1_ref, b1_ref, wqkv_ref, bqkv_ref, wp_ref, bp_ref,
                  g2_ref, b2_ref, w1_ref, bb1_ref, w2_ref, bb2_ref,
                  o_ref, qkv_ref, acc_ref,
                  *, num_heads, head_dim, scale, recip_approx):
    C = num_heads * head_dim
    x = x_ref[...].astype(jnp.float32)                         # (N, C)

    # ---- LayerNorm1 -> QKV projection (single wide, lane-dense MXU matmul).
    xn = _layernorm(x, g1_ref[...], b1_ref[...])
    qkv_ref[...] = (jnp.dot(xn.astype(wqkv_ref.dtype), wqkv_ref[...],
                            preferred_element_type=jnp.float32)
                    + bqkv_ref[...]).astype(qkv_ref.dtype)

    # ---- Multi-head attention: accumulate projected head contributions
    # ---- directly into a lane-dense (N, C) f32 accumulator.
    acc_ref[...] = jnp.zeros_like(acc_ref)
    for h in range(num_heads):
        lo = h * head_dim
        q = qkv_ref[:, lo:lo + head_dim] * scale               # scale folded into q
        k = qkv_ref[:, C + lo:C + lo + head_dim]
        v = qkv_ref[:, 2 * C + lo:2 * C + lo + head_dim]
        s = lax.dot_general(q, k, _NT_DIMS,
                            preferred_element_type=jnp.float32)  # (N, N)
        s = s - jnp.max(s, axis=-1, keepdims=True)              # stable softmax
        p = jnp.exp(s)
        p = p * pl.reciprocal(jnp.sum(p, axis=-1, keepdims=True),
                              approx=recip_approx)
        o_h = jnp.dot(p.astype(v.dtype), v,
                      preferred_element_type=jnp.float32)        # (N, head_dim)
        # Fold the head output into the output projection: full-width store.
        acc_ref[...] += jnp.dot(o_h.astype(wp_ref.dtype),
                                wp_ref[lo:lo + head_dim, :],
                                preferred_element_type=jnp.float32)

    x1 = x + acc_ref[...] + bp_ref[...]                          # residual 1

    # ---- LayerNorm2 -> fc1 -> exact GELU -> fc2 -> residual 2.
    xn2 = _layernorm(x1, g2_ref[...], b2_ref[...])
    h1 = (jnp.dot(xn2.astype(w1_ref.dtype), w1_ref[...],
                  preferred_element_type=jnp.float32) + bb1_ref[...])
    h1 = _gelu_exact(h1)
    y2 = (jnp.dot(h1.astype(w2_ref.dtype), w2_ref[...],
                  preferred_element_type=jnp.float32) + bb2_ref[...])
    o_ref[...] = (x1 + y2).astype(o_ref.dtype)


def block_forward(x, params, *, num_heads, softmax_recip_approx=False):
    B, N, C = x.shape
    assert C % num_heads == 0
    head_dim = C // num_heads
    scale = head_dim ** (-0.5)
    H = params["w1"].shape[1]

    kernel = partial(_block_kernel, num_heads=num_heads, head_dim=head_dim,
                     scale=scale, recip_approx=softmax_recip_approx)

    batch_map = lambda b: (b, 0, 0)
    const_map = lambda b: (0, 0)

    return pl.pallas_call(
        kernel,
        out_shape=jax.ShapeDtypeStruct((B, N, C), x.dtype),
        grid_spec=pltpu.PrefetchScalarGridSpec(
            num_scalar_prefetch=0,
            grid=(B,),
            in_specs=[
                pl.BlockSpec((None, N, C), batch_map),   # x (batch b)
                pl.BlockSpec((1, C), const_map),         # ln1 gamma
                pl.BlockSpec((1, C), const_map),         # ln1 beta
                pl.BlockSpec((C, 3 * C), const_map),     # W_qkv
                pl.BlockSpec((1, 3 * C), const_map),     # b_qkv
                pl.BlockSpec((C, C), const_map),         # W_proj
                pl.BlockSpec((1, C), const_map),         # b_proj
                pl.BlockSpec((1, C), const_map),         # ln2 gamma
                pl.BlockSpec((1, C), const_map),         # ln2 beta
                pl.BlockSpec((C, H), const_map),         # W1
                pl.BlockSpec((1, H), const_map),         # b1
                pl.BlockSpec((H, C), const_map),         # W2
                pl.BlockSpec((1, C), const_map),         # b2
            ],
            out_specs=pl.BlockSpec((None, N, C), batch_map),
            scratch_shapes=[
                pltpu.VMEM((N, 3 * C), x.dtype),     # qkv (activation dtype)
                pltpu.VMEM((N, C), jnp.float32),     # attn + proj accumulator
            ],
        ),
        # vmem_limit_bytes left at the default (demo shapes need <1 MiB).  For
        # real ViT sizes pick a per-generation value, e.g.
        # ~0.75 * pltpu.get_tpu_info().vmem_capacity_bytes (never the full
        # physical VMEM on v7x).
        compiler_params=pltpu.CompilerParams(
            dimension_semantics=("parallel",)),
    )(x,
      params["ln1_g"].reshape(1, C), params["ln1_b"].reshape(1, C),
      params["wqkv"], params["bqkv"].reshape(1, 3 * C),
      params["wproj"], params["bproj"].reshape(1, C),
      params["ln2_g"].reshape(1, C), params["ln2_b"].reshape(1, C),
      params["w1"], params["b1"].reshape(1, H),
      params["w2"], params["b2"].reshape(1, C))


# ---------------------------------------------------------------------------
# Pure-JAX reference for validation.
# ---------------------------------------------------------------------------
def block_reference(x, params, *, num_heads):
    def ln(z, g, b):
        mean = z.mean(-1, keepdims=True)
        var = jnp.square(z - mean).mean(-1, keepdims=True)
        return (z - mean) / jnp.sqrt(var + _LN_EPS) * g + b

    B, N, C = x.shape
    hd = C // num_heads
    scale = hd ** (-0.5)

    xn = ln(x, params["ln1_g"], params["ln1_b"])
    qkv = xn @ params["wqkv"] + params["bqkv"]
    qkv = qkv.reshape(B, N, 3, num_heads, hd).transpose(2, 0, 3, 1, 4)
    q, k, v = qkv[0], qkv[1], qkv[2]                      # (B, nh, N, hd)
    att = jax.nn.softmax(jnp.einsum("bhqd,bhkd->bhqk", q, k) * scale, axis=-1)
    out = jnp.einsum("bhqk,bhkd->bhqd", att, v)
    out = out.transpose(0, 2, 1, 3).reshape(B, N, C)
    x = x + (out @ params["wproj"] + params["bproj"])

    xn = ln(x, params["ln2_g"], params["ln2_b"])
    h = _gelu_exact(xn @ params["w1"] + params["b1"])
    x = x + (h @ params["w2"] + params["b2"])
    return x


if __name__ == "__main__":
    # Small ViT-ish Block: batch=2, tokens=8, dim=32, heads=4, mlp_ratio=4.
    B, N, C = 2, 8, 32
    num_heads = 4
    H = 4 * C

    key = jax.random.PRNGKey(0)
    ks = jax.random.split(key, 12)

    x = jax.random.normal(ks[0], (B, N, C), dtype=jnp.float32)

    lim_c = 1.0 / math.sqrt(C)
    lim_h = 1.0 / math.sqrt(H)
    params = dict(
        ln1_g=1.0 + 0.1 * jax.random.normal(ks[1], (C,), jnp.float32),
        ln1_b=0.1 * jax.random.normal(ks[2], (C,), jnp.float32),
        wqkv=jax.random.uniform(ks[3], (C, 3 * C), jnp.float32, -lim_c, lim_c),
        bqkv=jnp.zeros((3 * C,), jnp.float32),            # qkv_bias=False default
        wproj=jax.random.uniform(ks[4], (C, C), jnp.float32, -lim_c, lim_c),
        bproj=jax.random.uniform(ks[5], (C,), jnp.float32, -lim_c, lim_c),
        ln2_g=1.0 + 0.1 * jax.random.normal(ks[6], (C,), jnp.float32),
        ln2_b=0.1 * jax.random.normal(ks[7], (C,), jnp.float32),
        w1=jax.random.uniform(ks[8], (C, H), jnp.float32, -lim_c, lim_c),
        b1=jax.random.uniform(ks[9], (H,), jnp.float32, -lim_c, lim_c),
        w2=jax.random.uniform(ks[10], (H, C), jnp.float32, -lim_h, lim_h),
        b2=jax.random.uniform(ks[11], (C,), jnp.float32, -lim_h, lim_h),
    )

    out = block_forward(x, params, num_heads=num_heads)
    out = jax.block_until_ready(out)

    ref = block_reference(x, params, num_heads=num_heads)
    assert out.shape == (B, N, C)
    max_err = float(jnp.max(jnp.abs(out - ref)))
    assert jnp.allclose(out, ref, atol=1e-4, rtol=1e-4), f"mismatch, max_err={max_err}"

    print("KERNEL_OK")
</pallas_src>

<mosaic_0001>
module attributes {stable_mosaic.version = 11 : i64} {
  func.func @_block_kernel(%arg0: i32, %arg1: memref<1x8x32xf32, #tpu.memory_space<vmem>>, %arg2: memref<1x32xf32, #tpu.memory_space<vmem>>, %arg3: memref<1x32xf32, #tpu.memory_space<vmem>>, %arg4: memref<32x96xf32, #tpu.memory_space<vmem>>, %arg5: memref<1x96xf32, #tpu.memory_space<vmem>>, %arg6: memref<32x32xf32, #tpu.memory_space<vmem>>, %arg7: memref<1x32xf32, #tpu.memory_space<vmem>>, %arg8: memref<1x32xf32, #tpu.memory_space<vmem>>, %arg9: memref<1x32xf32, #tpu.memory_space<vmem>>, %arg10: memref<32x128xf32, #tpu.memory_space<vmem>>, %arg11: memref<1x128xf32, #tpu.memory_space<vmem>>, %arg12: memref<128x32xf32, #tpu.memory_space<vmem>>, %arg13: memref<1x32xf32, #tpu.memory_space<vmem>>, %arg14: memref<1x8x32xf32, #tpu.memory_space<vmem>>, %arg15: memref<8x96xf32, #tpu.memory_space<vmem>>, %arg16: memref<8x32xf32, #tpu.memory_space<vmem>>) attributes {dimension_semantics = [#tpu.dimension_semantics<parallel>], iteration_bounds = array<i64: 2>, scalar_prefetch = 0 : i64, scratch_operands = 2 : i64, tpu.core_type = #tpu.core_type<tc>, window_params = [{transform_indices = @transform_0, window_bounds = array<i64: 1, 8, 32>}, {pipeline_mode = #tpu.pipeline_mode<synchronous>, transform_indices = @transform_1, window_bounds = array<i64: 1, 32>}, {pipeline_mode = #tpu.pipeline_mode<synchronous>, transform_indices = @transform_2, window_bounds = array<i64: 1, 32>}, {pipeline_mode = #tpu.pipeline_mode<synchronous>, transform_indices = @transform_3, window_bounds = array<i64: 32, 96>}, {pipeline_mode = #tpu.pipeline_mode<synchronous>, transform_indices = @transform_4, window_bounds = array<i64: 1, 96>}, {pipeline_mode = #tpu.pipeline_mode<synchronous>, transform_indices = @transform_5, window_bounds = array<i64: 32, 32>}, {pipeline_mode = #tpu.pipeline_mode<synchronous>, transform_indices = @transform_6, window_bounds = array<i64: 1, 32>}, {pipeline_mode = #tpu.pipeline_mode<synchronous>, transform_indices = @transform_7, window_bounds = array<i64: 1, 32>}, {pipeline_mode = #tpu.pipeline_mode<synchronous>, transform_indices = @transform_8, window_bounds = array<i64: 1, 32>}, {pipeline_mode = #tpu.pipeline_mode<synchronous>, transform_indices = @transform_9, window_bounds = array<i64: 32, 128>}, {pipeline_mode = #tpu.pipeline_mode<synchronous>, transform_indices = @transform_10, window_bounds = array<i64: 1, 128>}, {pipeline_mode = #tpu.pipeline_mode<synchronous>, transform_indices = @transform_11, window_bounds = array<i64: 128, 32>}, {pipeline_mode = #tpu.pipeline_mode<synchronous>, transform_indices = @transform_12, window_bounds = array<i64: 1, 32>}, {transform_indices = @transform_13, window_bounds = array<i64: 1, 8, 32>}]} {
    %c0 = arith.constant 0 : index
    %c0_0 = arith.constant 0 : index
    %c0_1 = arith.constant 0 : index
    %0 = vector.load %arg1[%c0, %c0_0, %c0_1] : memref<1x8x32xf32, #tpu.memory_space<vmem>>, vector<1x8x32xf32>
    %1 = vector.shape_cast %0 : vector<1x8x32xf32> to vector<8x32xf32>
    %c0_2 = arith.constant 0 : index
    %c0_3 = arith.constant 0 : index
    %2 = vector.load %arg2[%c0_2, %c0_3] : memref<1x32xf32, #tpu.memory_space<vmem>>, vector<1x32xf32>
    %c0_4 = arith.constant 0 : index
    %c0_5 = arith.constant 0 : index
    %3 = vector.load %arg3[%c0_4, %c0_5] : memref<1x32xf32, #tpu.memory_space<vmem>>, vector<1x32xf32>
    %cst = arith.constant dense<0.000000e+00> : vector<8xf32>
    %4 = vector.multi_reduction <add>, %1, %cst [1] : vector<8x32xf32> to vector<8xf32>
    %5 = vector.shape_cast %4 : vector<8xf32> to vector<8x1xf32>
    %cst_6 = arith.constant 3.200000e+01 : f32
    %6 = vector.broadcast %cst_6 : f32 to vector<8x1xf32>
    %7 = arith.divf %5, %6 : vector<8x1xf32>
    %8 = vector.broadcast %7 : vector<8x1xf32> to vector<8x32xf32>
    %9 = arith.subf %1, %8 : vector<8x32xf32>
    %10 = arith.mulf %9, %9 : vector<8x32xf32>
    %cst_7 = arith.constant dense<0.000000e+00> : vector<8xf32>
    %11 = vector.multi_reduction <add>, %10, %cst_7 [1] : vector<8x32xf32> to vector<8xf32>
    %12 = vector.shape_cast %11 : vector<8xf32> to vector<8x1xf32>
    %cst_8 = arith.constant 3.200000e+01 : f32
    %13 = vector.broadcast %cst_8 : f32 to vector<8x1xf32>
    %14 = arith.divf %12, %13 : vector<8x1xf32>
    %cst_9 = arith.constant 9.99999997E-7 : f32
    %15 = vector.broadcast %cst_9 : f32 to vector<8x1xf32>
    %16 = arith.addf %14, %15 : vector<8x1xf32>
    %17 = math.rsqrt %16 : vector<8x1xf32>
    %18 = vector.broadcast %17 : vector<8x1xf32> to vector<8x32xf32>
    %19 = arith.mulf %9, %18 : vector<8x32xf32>
    %20 = vector.broadcast %2 : vector<1x32xf32> to vector<8x32xf32>
    %21 = arith.mulf %19, %20 : vector<8x32xf32>
    %22 = vector.broadcast %3 : vector<1x32xf32> to vector<8x32xf32>
    %23 = arith.addf %21, %22 : vector<8x32xf32>
    %c0_10 = arith.constant 0 : index
    %c0_11 = arith.constant 0 : index
    %24 = vector.load %arg4[%c0_10, %c0_11] : memref<32x96xf32, #tpu.memory_space<vmem>>, vector<32x96xf32>
    %cst_12 = arith.constant dense<0.000000e+00> : vector<8x96xf32>
    %25 = tpu.matmul %23, %24, %cst_12 {dimension_numbers = #tpu.dot_dimension_numbers<[1], [0], [0], [1], [0, 0, 1, 1], [], []>} : vector<8x32xf32>, vector<32x96xf32>, vector<8x96xf32> -> vector<8x96xf32>
    %c0_13 = arith.constant 0 : index
    %c0_14 = arith.constant 0 : index
    %26 = vector.load %arg5[%c0_13, %c0_14] : memref<1x96xf32, #tpu.memory_space<vmem>>, vector<1x96xf32>
    %27 = vector.broadcast %26 : vector<1x96xf32> to vector<8x96xf32>
    %28 = arith.addf %25, %27 : vector<8x96xf32>
    %c0_15 = arith.constant 0 : index
    %c0_16 = arith.constant 0 : index
    %29 = vector.load %arg15[%c0_15, %c0_16] : memref<8x96xf32, #tpu.memory_space<vmem>>, vector<8x96xf32>
    tpu.vector_store %arg15[%c0_15, %c0_16], %28 {strides = array<i32>} : memref<8x96xf32, #tpu.memory_space<vmem>>, vector<8x96xf32>,
    %cst_17 = arith.constant 0.000000e+00 : f32
    %30 = vector.broadcast %cst_17 : f32 to vector<8x32xf32>
    %c0_18 = arith.constant 0 : index
    %c0_19 = arith.constant 0 : index
    %31 = vector.load %arg16[%c0_18, %c0_19] : memref<8x32xf32, #tpu.memory_space<vmem>>, vector<8x32xf32>
    tpu.vector_store %arg16[%c0_18, %c0_19], %30 {strides = array<i32>} : memref<8x32xf32, #tpu.memory_space<vmem>>, vector<8x32xf32>,
    %c0_20 = arith.constant 0 : index
    %c0_21 = arith.constant 0 : index
    %32 = vector.load %arg15[%c0_20, %c0_21] : memref<8x96xf32, #tpu.memory_space<vmem>>, vector<8x8xf32>
    %cst_22 = arith.constant 0.353553385 : f32
    %33 = vector.broadcast %cst_22 : f32 to vector<8x8xf32>
    %34 = arith.mulf %32, %33 : vector<8x8xf32>
    %c0_23 = arith.constant 0 : index
    %c32 = arith.constant 32 : index
    %35 = vector.load %arg15[%c0_23, %c32] : memref<8x96xf32, #tpu.memory_space<vmem>>, vector<8x8xf32>
    %c0_24 = arith.constant 0 : index
    %c64 = arith.constant 64 : index
    %36 = vector.load %arg15[%c0_24, %c64] : memref<8x96xf32, #tpu.memory_space<vmem>>, vector<8x8xf32>
    %cst_25 = arith.constant dense<0.000000e+00> : vector<8x8xf32>
    %37 = tpu.matmul %34, %35, %cst_25 {dimension_numbers = #tpu.dot_dimension_numbers<[1], [1], [0], [0], [0, 0, 1, 0], [], []>} : vector<8x8xf32>, vector<8x8xf32>, vector<8x8xf32> -> vector<8x8xf32>
    %cst_26 = arith.constant dense<0xFF800000> : vector<8xf32>
    %38 = vector.multi_reduction <maximumf>, %37, %cst_26 [1] : vector<8x8xf32> to vector<8xf32>
    %39 = vector.shape_cast %38 : vector<8xf32> to vector<8x1xf32>
    %40 = vector.broadcast %39 : vector<8x1xf32> to vector<8x8xf32>
    %41 = arith.subf %37, %40 : vector<8x8xf32>
    %42 = math.exp %41 : vector<8x8xf32>
    %cst_27 = arith.constant dense<0.000000e+00> : vector<8xf32>
    %43 = vector.multi_reduction <add>, %42, %cst_27 [1] : vector<8x8xf32> to vector<8xf32>
    %44 = vector.shape_cast %43 : vector<8xf32> to vector<8x1xf32>
    %45 = tpu.reciprocal %44 : vector<8x1xf32> -> vector<8x1xf32>
    %46 = vector.broadcast %45 : vector<8x1xf32> to vector<8x8xf32>
    %47 = arith.mulf %42, %46 : vector<8x8xf32>
    %cst_28 = arith.constant dense<0.000000e+00> : vector<8x8xf32>
    %48 = tpu.matmul %47, %36, %cst_28 {dimension_numbers = #tpu.dot_dimension_numbers<[1], [0], [0], [1], [0, 0, 1, 1], [], []>} : vector<8x8xf32>, vector<8x8xf32>, vector<8x8xf32> -> vector<8x8xf32>
    %c0_29 = arith.constant 0 : index
    %c0_30 = arith.constant 0 : index
    %49 = vector.load %arg16[%c0_29, %c0_30] : memref<8x32xf32, #tpu.memory_space<vmem>>, vector<8x32xf32>
    %c0_31 = arith.constant 0 : index
    %c0_32 = arith.constant 0 : index
    %50 = vector.load %arg6[%c0_31, %c0_32] : memref<32x32xf32, #tpu.memory_space<vmem>>, vector<8x32xf32>
    %cst_33 = arith.constant dense<0.000000e+00> : vector<8x32xf32>
    %51 = tpu.matmul %48, %50, %cst_33 {dimension_numbers = #tpu.dot_dimension_numbers<[1], [0], [0], [1], [0, 0, 1, 1], [], []>} : vector<8x8xf32>, vector<8x32xf32>, vector<8x32xf32> -> vector<8x32xf32>
    %52 = arith.addf %49, %51 : vector<8x32xf32>
    %c0_34 = arith.constant 0 : index
    %c0_35 = arith.constant 0 : index
    %53 = vector.load %arg16[%c0_34, %c0_35] : memref<8x32xf32, #tpu.memory_space<vmem>>, vector<8x32xf32>
    tpu.vector_store %arg16[%c0_34, %c0_35], %52 {strides = array<i32>} : memref<8x32xf32, #tpu.memory_space<vmem>>, vector<8x32xf32>,
    %c0_36 = arith.constant 0 : index
    %c8 = arith.constant 8 : index
    %54 = vector.load %arg15[%c0_36, %c8] : memref<8x96xf32, #tpu.memory_space<vmem>>, vector<8x8xf32>
    %cst_37 = arith.constant 0.353553385 : f32
    %55 = vector.broadcast %cst_37 : f32 to vector<8x8xf32>
    %56 = arith.mulf %54, %55 : vector<8x8xf32>
    %c0_38 = arith.constant 0 : index
    %c40 = arith.constant 40 : index
    %57 = vector.load %arg15[%c0_38, %c40] : memref<8x96xf32, #tpu.memory_space<vmem>>, vector<8x8xf32>
    %c0_39 = arith.constant 0 : index
    %c72 = arith.constant 72 : index
    %58 = vector.load %arg15[%c0_39, %c72] : memref<8x96xf32, #tpu.memory_space<vmem>>, vector<8x8xf32>
    %cst_40 = arith.constant dense<0.000000e+00> : vector<8x8xf32>
    %59 = tpu.matmul %56, %57, %cst_40 {dimension_numbers = #tpu.dot_dimension_numbers<[1], [1], [0], [0], [0, 0, 1, 0], [], []>} : vector<8x8xf32>, vector<8x8xf32>, vector<8x8xf32> -> vector<8x8xf32>
    %cst_41 = arith.constant dense<0xFF800000> : vector<8xf32>
    %60 = vector.multi_reduction <maximumf>, %59, %cst_41 [1] : vector<8x8xf32> to vector<8xf32>
    %61 = vector.shape_cast %60 : vector<8xf32> to vector<8x1xf32>
    %62 = vector.broadcast %61 : vector<8x1xf32> to vector<8x8xf32>
    %63 = arith.subf %59, %62 : vector<8x8xf32>
    %64 = math.exp %63 : vector<8x8xf32>
    %cst_42 = arith.constant dense<0.000000e+00> : vector<8xf32>
    %65 = vector.multi_reduction <add>, %64, %cst_42 [1] : vector<8x8xf32> to vector<8xf32>
    %66 = vector.shape_cast %65 : vector<8xf32> to vector<8x1xf32>
    %67 = tpu.reciprocal %66 : vector<8x1xf32> -> vector<8x1xf32>
    %68 = vector.broadcast %67 : vector<8x1xf32> to vector<8x8xf32>
    %69 = arith.mulf %64, %68 : vector<8x8xf32>
    %cst_43 = arith.constant dense<0.000000e+00> : vector<8x8xf32>
    %70 = tpu.matmul %69, %58, %cst_43 {dimension_numbers = #tpu.dot_dimension_numbers<[1], [0], [0], [1], [0, 0, 1, 1], [], []>} : vector<8x8xf32>, vector<8x8xf32>, vector<8x8xf32> -> vector<8x8xf32>
    %c0_44 = arith.constant 0 : index
    %c0_45 = arith.constant 0 : index
    %71 = vector.load %arg16[%c0_44, %c0_45] : memref<8x32xf32, #tpu.memory_space<vmem>>, vector<8x32xf32>
    %c8_46 = arith.constant 8 : index
    %c0_47 = arith.constant 0 : index
    %72 = vector.load %arg6[%c8_46, %c0_47] : memref<32x32xf32, #tpu.memory_space<vmem>>, vector<8x32xf32>
    %cst_48 = arith.constant dense<0.000000e+00> : vector<8x32xf32>
    %73 = tpu.matmul %70, %72, %cst_48 {dimension_numbers = #tpu.dot_dimension_numbers<[1], [0], [0], [1], [0, 0, 1, 1], [], []>} : vector<8x8xf32>, vector<8x32xf32>, vector<8x32xf32> -> vector<8x32xf32>
    %74 = arith.addf %71, %73 : vector<8x32xf32>
    %c0_49 = arith.constant 0 : index
    %c0_50 = arith.constant 0 : index
    %75 = vector.load %arg16[%c0_49, %c0_50] : memref<8x32xf32, #tpu.memory_space<vmem>>, vector<8x32xf32>
    tpu.vector_store %arg16[%c0_49, %c0_50], %74 {strides = array<i32>} : memref<8x32xf32, #tpu.memory_space<vmem>>, vector<8x32xf32>,
    %c0_51 = arith.constant 0 : index
    %c16 = arith.constant 16 : index
    %76 = vector.load %arg15[%c0_51, %c16] : memref<8x96xf32, #tpu.memory_space<vmem>>, vector<8x8xf32>
    %cst_52 = arith.constant 0.353553385 : f32
    %77 = vector.broadcast %cst_52 : f32 to vector<8x8xf32>
    %78 = arith.mulf %76, %77 : vector<8x8xf32>
    %c0_53 = arith.constant 0 : index
    %c48 = arith.constant 48 : index
    %79 = vector.load %arg15[%c0_53, %c48] : memref<8x96xf32, #tpu.memory_space<vmem>>, vector<8x8xf32>
    %c0_54 = arith.constant 0 : index
    %c80 = arith.constant 80 : index
    %80 = vector.load %arg15[%c0_54, %c80] : memref<8x96xf32, #tpu.memory_space<vmem>>, vector<8x8xf32>
    %cst_55 = arith.constant dense<0.000000e+00> : vector<8x8xf32>
    %81 = tpu.matmul %78, %79, %cst_55 {dimension_numbers = #tpu.dot_dimension_numbers<[1], [1], [0], [0], [0, 0, 1, 0], [], []>} : vector<8x8xf32>, vector<8x8xf32>, vector<8x8xf32> -> vector<8x8xf32>
    %cst_56 = arith.constant dense<0xFF800000> : vector<8xf32>
    %82 = vector.multi_reduction <maximumf>, %81, %cst_56 [1] : vector<8x8xf32> to vector<8xf32>
    %83 = vector.shape_cast %82 : vector<8xf32> to vector<8x1xf32>
    %84 = vector.broadcast %83 : vector<8x1xf32> to vector<8x8xf32>
    %85 = arith.subf %81, %84 : vector<8x8xf32>
    %86 = math.exp %85 : vector<8x8xf32>
    %cst_57 = arith.constant dense<0.000000e+00> : vector<8xf32>
    %87 = vector.multi_reduction <add>, %86, %cst_57 [1] : vector<8x8xf32> to vector<8xf32>
    %88 = vector.shape_cast %87 : vector<8xf32> to vector<8x1xf32>
    %89 = tpu.reciprocal %88 : vector<8x1xf32> -> vector<8x1xf32>
    %90 = vector.broadcast %89 : vector<8x1xf32> to vector<8x8xf32>
    %91 = arith.mulf %86, %90 : vector<8x8xf32>
    %cst_58 = arith.constant dense<0.000000e+00> : vector<8x8xf32>
    %92 = tpu.matmul %91, %80, %cst_58 {dimension_numbers = #tpu.dot_dimension_numbers<[1], [0], [0], [1], [0, 0, 1, 1], [], []>} : vector<8x8xf32>, vector<8x8xf32>, vector<8x8xf32> -> vector<8x8xf32>
    %c0_59 = arith.constant 0 : index
    %c0_60 = arith.constant 0 : index
    %93 = vector.load %arg16[%c0_59, %c0_60] : memref<8x32xf32, #tpu.memory_space<vmem>>, vector<8x32xf32>
    %c16_61 = arith.constant 16 : index
    %c0_62 = arith.constant 0 : index
    %94 = vector.load %arg6[%c16_61, %c0_62] : memref<32x32xf32, #tpu.memory_space<vmem>>, vector<8x32xf32>
    %cst_63 = arith.constant dense<0.000000e+00> : vector<8x32xf32>
    %95 = tpu.matmul %92, %94, %cst_63 {dimension_numbers = #tpu.dot_dimension_numbers<[1], [0], [0], [1], [0, 0, 1, 1], [], []>} : vector<8x8xf32>, vector<8x32xf32>, vector<8x32xf32> -> vector<8x32xf32>
    %96 = arith.addf %93, %95 : vector<8x32xf32>
    %c0_64 = arith.constant 0 : index
    %c0_65 = arith.constant 0 : index
    %97 = vector.load %arg16[%c0_64, %c0_65] : memref<8x32xf32, #tpu.memory_space<vmem>>, vector<8x32xf32>
    tpu.vector_store %arg16[%c0_64, %c0_65], %96 {strides = array<i32>} : memref<8x32xf32, #tpu.memory_space<vmem>>, vector<8x32xf32>,
    %c0_66 = arith.constant 0 : index
    %c24 = arith.constant 24 : index
    %98 = vector.load %arg15[%c0_66, %c24] : memref<8x96xf32, #tpu.memory_space<vmem>>, vector<8x8xf32>
    %cst_67 = arith.constant 0.353553385 : f32
    %99 = vector.broadcast %cst_67 : f32 to vector<8x8xf32>
    %100 = arith.mulf %98, %99 : vector<8x8xf32>
    %c0_68 = arith.constant 0 : index
    %c56 = arith.constant 56 : index
    %101 = vector.load %arg15[%c0_68, %c56] : memref<8x96xf32, #tpu.memory_space<vmem>>, vector<8x8xf32>
    %c0_69 = arith.constant 0 : index
    %c88 = arith.constant 88 : index
    %102 = vector.load %arg15[%c0_69, %c88] : memref<8x96xf32, #tpu.memory_space<vmem>>, vector<8x8xf32>
    %cst_70 = arith.constant dense<0.000000e+00> : vector<8x8xf32>
    %103 = tpu.matmul %100, %101, %cst_70 {dimension_numbers = #tpu.dot_dimension_numbers<[1], [1], [0], [0], [0, 0, 1, 0], [], []>} : vector<8x8xf32>, vector<8x8xf32>, vector<8x8xf32> -> vector<8x8xf32>
    %cst_71 = arith.constant dense<0xFF800000> : vector<8xf32>
    %104 = vector.multi_reduction <maximumf>, %103, %cst_71 [1] : vector<8x8xf32> to vector<8xf32>
    %105 = vector.shape_cast %104 : vector<8xf32> to vector<8x1xf32>
    %106 = vector.broadcast %105 : vector<8x1xf32> to vector<8x8xf32>
    %107 = arith.subf %103, %106 : vector<8x8xf32>
    %108 = math.exp %107 : vector<8x8xf32>
    %cst_72 = arith.constant dense<0.000000e+00> : vector<8xf32>
    %109 = vector.multi_reduction <add>, %108, %cst_72 [1] : vector<8x8xf32> to vector<8xf32>
    %110 = vector.shape_cast %109 : vector<8xf32> to vector<8x1xf32>
    %111 = tpu.reciprocal %110 : vector<8x1xf32> -> vector<8x1xf32>
    %112 = vector.broadcast %111 : vector<8x1xf32> to vector<8x8xf32>
    %113 = arith.mulf %108, %112 : vector<8x8xf32>
    %cst_73 = arith.constant dense<0.000000e+00> : vector<8x8xf32>
    %114 = tpu.matmul %113, %102, %cst_73 {dimension_numbers = #tpu.dot_dimension_numbers<[1], [0], [0], [1], [0, 0, 1, 1], [], []>} : vector<8x8xf32>, vector<8x8xf32>, vector<8x8xf32> -> vector<8x8xf32>
    %c0_74 = arith.constant 0 : index
    %c0_75 = arith.constant 0 : index
    %115 = vector.load %arg16[%c0_74, %c0_75] : memref<8x32xf32, #tpu.memory_space<vmem>>, vector<8x32xf32>
    %c24_76 = arith.constant 24 : index
    %c0_77 = arith.constant 0 : index
    %116 = vector.load %arg6[%c24_76, %c0_77] : memref<32x32xf32, #tpu.memory_space<vmem>>, vector<8x32xf32>
    %cst_78 = arith.constant dense<0.000000e+00> : vector<8x32xf32>
    %117 = tpu.matmul %114, %116, %cst_78 {dimension_numbers = #tpu.dot_dimension_numbers<[1], [0], [0], [1], [0, 0, 1, 1], [], []>} : vector<8x8xf32>, vector<8x32xf32>, vector<8x32xf32> -> vector<8x32xf32>
    %118 = arith.addf %115, %117 : vector<8x32xf32>
    %c0_79 = arith.constant 0 : index
    %c0_80 = arith.constant 0 : index
    %119 = vector.load %arg16[%c0_79, %c0_80] : memref<8x32xf32, #tpu.memory_space<vmem>>, vector<8x32xf32>
    tpu.vector_store %arg16[%c0_79, %c0_80], %118 {strides = array<i32>} : memref<8x32xf32, #tpu.memory_space<vmem>>, vector<8x32xf32>,
    %c0_81 = arith.constant 0 : index
    %c0_82 = arith.constant 0 : index
    %120 = vector.load %arg16[%c0_81, %c0_82] : memref<8x32xf32, #tpu.memory_space<vmem>>, vector<8x32xf32>
    %121 = arith.addf %1, %120 : vector<8x32xf32>
    %c0_83 = arith.constant 0 : index
    %c0_84 = arith.constant 0 : index
    %122 = vector.load %arg7[%c0_83, %c0_84] : memref<1x32xf32, #tpu.memory_space<vmem>>, vector<1x32xf32>
    %123 = vector.broadcast %122 : vector<1x32xf32> to vector<8x32xf32>
    %124 = arith.addf %121, %123 : vector<8x32xf32>
    %c0_85 = arith.constant 0 : index
    %c0_86 = arith.constant 0 : index
    %125 = vector.load %arg8[%c0_85, %c0_86] : memref<1x32xf32, #tpu.memory_space<vmem>>, vector<1x32xf32>
    %c0_87 = arith.constant 0 : index
    %c0_88 = arith.constant 0 : index
    %126 = vector.load %arg9[%c0_87, %c0_88] : memref<1x32xf32, #tpu.memory_space<vmem>>, vector<1x32xf32>
    %cst_89 = arith.constant dense<0.000000e+00> : vector<8xf32>
    %127 = vector.multi_reduction <add>, %124, %cst_89 [1] : vector<8x32xf32> to vector<8xf32>
    %128 = vector.shape_cast %127 : vector<8xf32> to vector<8x1xf32>
    %cst_90 = arith.constant 3.200000e+01 : f32
    %129 = vector.broadcast %cst_90 : f32 to vector<8x1xf32>
    %130 = arith.divf %128, %129 : vector<8x1xf32>
    %131 = vector.broadcast %130 : vector<8x1xf32> to vector<8x32xf32>
    %132 = arith.subf %124, %131 : vector<8x32xf32>
    %133 = arith.mulf %132, %132 : vector<8x32xf32>
    %cst_91 = arith.constant dense<0.000000e+00> : vector<8xf32>
    %134 = vector.multi_reduction <add>, %133, %cst_91 [1] : vector<8x32xf32> to vector<8xf32>
    %135 = vector.shape_cast %134 : vector<8xf32> to vector<8x1xf32>
    %cst_92 = arith.constant 3.200000e+01 : f32
    %136 = vector.broadcast %cst_92 : f32 to vector<8x1xf32>
    %137 = arith.divf %135, %136 : vector<8x1xf32>
    %cst_93 = arith.constant 9.99999997E-7 : f32
    %138 = vector.broadcast %cst_93 : f32 to vector<8x1xf32>
    %139 = arith.addf %137, %138 : vector<8x1xf32>
    %140 = math.rsqrt %139 : vector<8x1xf32>
    %141 = vector.broadcast %140 : vector<8x1xf32> to vector<8x32xf32>
    %142 = arith.mulf %132, %141 : vector<8x32xf32>
    %143 = vector.broadcast %125 : vector<1x32xf32> to vector<8x32xf32>
    %144 = arith.mulf %142, %143 : vector<8x32xf32>
    %145 = vector.broadcast %126 : vector<1x32xf32> to vector<8x32xf32>
    %146 = arith.addf %144, %145 : vector<8x32xf32>
    %c0_94 = arith.constant 0 : index
    %c0_95 = arith.constant 0 : index
    %147 = vector.load %arg10[%c0_94, %c0_95] : memref<32x128xf32, #tpu.memory_space<vmem>>, vector<32x128xf32>
    %cst_96 = arith.constant dense<0.000000e+00> : vector<8x128xf32>
    %148 = tpu.matmul %146, %147, %cst_96 {dimension_numbers = #tpu.dot_dimension_numbers<[1], [0], [0], [1], [0, 0, 1, 1], [], []>} : vector<8x32xf32>, vector<32x128xf32>, vector<8x128xf32> -> vector<8x128xf32>
    %c0_97 = arith.constant 0 : index
    %c0_98 = arith.constant 0 : index
    %149 = vector.load %arg11[%c0_97, %c0_98] : memref<1x128xf32, #tpu.memory_space<vmem>>, vector<1x128xf32>
    %150 = vector.broadcast %149 : vector<1x128xf32> to vector<8x128xf32>
    %151 = arith.addf %148, %150 : vector<8x128xf32>
    %cst_99 = arith.constant 5.000000e-01 : f32
    %152 = vector.broadcast %cst_99 : f32 to vector<8x128xf32>
    %153 = arith.mulf %152, %151 : vector<8x128xf32>
    %cst_100 = arith.constant 0.707106769 : f32
    %154 = vector.broadcast %cst_100 : f32 to vector<8x128xf32>
    %155 = arith.mulf %151, %154 : vector<8x128xf32>
    %156 = math.erf %155 : vector<8x128xf32>
    %cst_101 = arith.constant 1.000000e+00 : f32
    %157 = vector.broadcast %cst_101 : f32 to vector<8x128xf32>
    %158 = arith.addf %157, %156 : vector<8x128xf32>
    %159 = arith.mulf %153, %158 : vector<8x128xf32>
    %c0_102 = arith.constant 0 : index
    %c0_103 = arith.constant 0 : index
    %160 = vector.load %arg12[%c0_102, %c0_103] : memref<128x32xf32, #tpu.memory_space<vmem>>, vector<128x32xf32>
    %cst_104 = arith.constant dense<0.000000e+00> : vector<8x32xf32>
    %161 = tpu.matmul %159, %160, %cst_104 {dimension_numbers = #tpu.dot_dimension_numbers<[1], [0], [0], [1], [0, 0, 1, 1], [], []>} : vector<8x128xf32>, vector<128x32xf32>, vector<8x32xf32> -> vector<8x32xf32>
    %c0_105 = arith.constant 0 : index
    %c0_106 = arith.constant 0 : index
    %162 = vector.load %arg13[%c0_105, %c0_106] : memref<1x32xf32, #tpu.memory_space<vmem>>, vector<1x32xf32>
    %163 = vector.broadcast %162 : vector<1x32xf32> to vector<8x32xf32>
    %164 = arith.addf %161, %163 : vector<8x32xf32>
    %165 = arith.addf %124, %164 : vector<8x32xf32>
    %c0_107 = arith.constant 0 : index
    %c0_108 = arith.constant 0 : index
    %c0_109 = arith.constant 0 : index
    %166 = vector.load %arg14[%c0_107, %c0_108, %c0_109] : memref<1x8x32xf32, #tpu.memory_space<vmem>>, vector<1x8x32xf32>
    %167 = vector.shape_cast %166 : vector<1x8x32xf32> to vector<8x32xf32>
    %168 = vector.shape_cast %165 : vector<8x32xf32> to vector<1x8x32xf32>
    tpu.vector_store %arg14[%c0_107, %c0_108, %c0_109], %168 {strides = array<i32>} : memref<1x8x32xf32, #tpu.memory_space<vmem>>, vector<1x8x32xf32>,
    return
  }
  func.func @transform_0(%arg0: i32) -> (i32, i32, i32) {
    %c0_i32 = arith.constant 0 : i32
    %c0_i32_0 = arith.constant 0 : i32
    %c0_i32_1 = arith.constant 0 : i32
    return %arg0, %c0_i32, %c0_i32_0 : i32, i32, i32
  }
  func.func @transform_1(%arg0: i32) -> (i32, i32) {
    %c0_i32 = arith.constant 0 : i32
    %c0_i32_0 = arith.constant 0 : i32
    %c0_i32_1 = arith.constant 0 : i32
    return %c0_i32, %c0_i32_0 : i32, i32
  }
  func.func @transform_2(%arg0: i32) -> (i32, i32) {
    %c0_i32 = arith.constant 0 : i32
    %c0_i32_0 = arith.constant 0 : i32
    %c0_i32_1 = arith.constant 0 : i32
    return %c0_i32, %c0_i32_0 : i32, i32
  }
  func.func @transform_3(%arg0: i32) -> (i32, i32) {
    %c0_i32 = arith.constant 0 : i32
    %c0_i32_0 = arith.constant 0 : i32
    %c0_i32_1 = arith.constant 0 : i32
    return %c0_i32, %c0_i32_0 : i32, i32
  }
  func.func @transform_4(%arg0: i32) -> (i32, i32) {
    %c0_i32 = arith.constant 0 : i32
    %c0_i32_0 = arith.constant 0 : i32
    %c0_i32_1 = arith.constant 0 : i32
    return %c0_i32, %c0_i32_0 : i32, i32
  }
  func.func @transform_5(%arg0: i32) -> (i32, i32) {
    %c0_i32 = arith.constant 0 : i32
    %c0_i32_0 = arith.constant 0 : i32
    %c0_i32_1 = arith.constant 0 : i32
    return %c0_i32, %c0_i32_0 : i32, i32
  }
  func.func @transform_6(%arg0: i32) -> (i32, i32) {
    %c0_i32 = arith.constant 0 : i32
    %c0_i32_0 = arith.constant 0 : i32
    %c0_i32_1 = arith.constant 0 : i32
    return %c0_i32, %c0_i32_0 : i32, i32
  }
  func.func @transform_7(%arg0: i32) -> (i32, i32) {
    %c0_i32 = arith.constant 0 : i32
    %c0_i32_0 = arith.constant 0 : i32
    %c0_i32_1 = arith.constant 0 : i32
    return %c0_i32, %c0_i32_0 : i32, i32
  }
  func.func @transform_8(%arg0: i32) -> (i32, i32) {
    %c0_i32 = arith.constant 0 : i32
    %c0_i32_0 = arith.constant 0 : i32
    %c0_i32_1 = arith.constant 0 : i32
    return %c0_i32, %c0_i32_0 : i32, i32
  }
  func.func @transform_9(%arg0: i32) -> (i32, i32) {
    %c0_i32 = arith.constant 0 : i32
    %c0_i32_0 = arith.constant 0 : i32
    %c0_i32_1 = arith.constant 0 : i32
    return %c0_i32, %c0_i32_0 : i32, i32
  }
  func.func @transform_10(%arg0: i32) -> (i32, i32) {
    %c0_i32 = arith.constant 0 : i32
    %c0_i32_0 = arith.constant 0 : i32
    %c0_i32_1 = arith.constant 0 : i32
    return %c0_i32, %c0_i32_0 : i32, i32
  }
  func.func @transform_11(%arg0: i32) -> (i32, i32) {
    %c0_i32 = arith.constant 0 : i32
    %c0_i32_0 = arith.constant 0 : i32
    %c0_i32_1 = arith.constant 0 : i32
    return %c0_i32, %c0_i32_0 : i32, i32
  }
  func.func @transform_12(%arg0: i32) -> (i32, i32) {
    %c0_i32 = arith.constant 0 : i32
    %c0_i32_0 = arith.constant 0 : i32
    %c0_i32_1 = arith.constant 0 : i32
    return %c0_i32, %c0_i32_0 : i32, i32
  }
  func.func @transform_13(%arg0: i32) -> (i32, i32, i32) {
    %c0_i32 = arith.constant 0 : i32
    %c0_i32_0 = arith.constant 0 : i32
    %c0_i32_1 = arith.constant 0 : i32
    return %arg0, %c0_i32, %c0_i32_0 : i32, i32, i32
  }
}

</mosaic_0001>

<bundles_post_ra>
// kernel: tpu_custom_call.1
= control target key start
LH: loop header
LB: loop body
LE: loop exit
PB: predicated region body
PF: predicated region fallthrough
CT: control target
= control target key end

     0   :  { %s2624_s0 = inlined_call_operand.vmem [shape: f32[2,8,32], index: 0, kind: input, shape index: {}]   ;;  %s2625_s1 = inlined_call_operand.vmem [shape: f32[1,32], index: 1, kind: input, shape index: {}]   ;;  %s2626_s2 = inlined_call_operand.vmem [shape: f32[1,32], index: 2, kind: input, shape index: {}]   ;;  %s2627_s3 = inlined_call_operand.vmem [shape: f32[32,96], index: 3, kind: input, shape index: {}]   ;;  %s2628_s4 = inlined_call_operand.vmem [shape: f32[1,96], index: 4, kind: input, shape index: {}]   ;;  %s2629_s5 = inlined_call_operand.vmem [shape: f32[32,32], index: 5, kind: input, shape index: {}]   ;;  %s2630_s6 = inlined_call_operand.vmem [shape: f32[1,32], index: 6, kind: input, shape index: {}]   ;;  %s2631_s7 = inlined_call_operand.vmem [shape: f32[1,32], index: 7, kind: input, shape index: {}]   ;;  %s2632_s8 = inlined_call_operand.vmem [shape: f32[1,32], index: 8, kind: input, shape index: {}]   ;;  %s2633_s9 = inlined_call_operand.vmem [shape: f32[32,128], index: 9, kind: input, shape index: {}]   ;;  %s2634_s10 = inlined_call_operand.vmem [shape: f32[1,128], index: 10, kind: input, shape index: {}]   ;;  %s2635_s11 = inlined_call_operand.vmem [shape: f32[128,32], index: 11, kind: input, shape index: {}]   ;;  %s2636_s12 = inlined_call_operand.vmem [shape: f32[1,32], index: 12, kind: input, shape index: {}]   ;;  %s2637_s13 = inlined_call_operand.hbm [shape: f32[2,8,32], index: 13, kind: output, shape index: {}]  }
   0x1   :  { %2638 = sst [smem:[#allocation7_spill]] %s2624_s0 }
   0x2   :  { %2639 = sst [smem:[#allocation8_spill]] %s2625_s1 }
   0x3   :  { %2640 = sst [smem:[#allocation9_spill]] %s2626_s2 }
   0x4   :  { %18 = vsyncpa [#allocation5], 0 }
   0x5   :  { %20 = vsyncpa [#allocation5 + $0x1], 0  ;;  %s2298_s25 = smov 0   ;;  %s2300_s26 = smov 0  }
   0x6   :  { %s2302_s27 = smov 0   ;;  %s2304_s28 = smov 0  }
   0x7 LB: > { %s2319_s29 = sadd.s32 4294967295, %s2211_s28   ;;  %s1834_s30 = sadd.s32 4294967294, %s2211_s28   ;;  %s2211_s28 = sphi %s2304_s28, %s2649_s28   ;;  %s2207_s27 = sphi %s2302_s27, %s2648_s27   ;;  %s2203_s26 = sphi %s2300_s26, %s2647_s26   ;;  %s2199_s25 = sphi %s2298_s25, %s2646_s25  }
   0x8   : > { %s2323_s14 = sadd.s32 1, %s2211_s28   ;;  %s311_s15 = sadd.s32 1, %s2207_s27 }
   0x9   : > { %s308_s16 = ssub.s32 %s2211_s28, %s2323_s14  ;;  %p321_p0 = scmp.ne.s32.totalorder %s2207_s27, %s2203_s26 }
   0xa   : > { %p309_p1 = scmp.eq.s32.totalorder %s308_s16, 0  ;;  %p322_p2 = scmp.eq.s32.totalorder %s2319_s29, 1 }
   0xb   : > { %p327_p3 = scmp.ne.s32.totalorder %s2203_s26, %s2199_s25  ;;  %p328_p4 = scmp.eq.s32.totalorder %s1834_s30, 1 }
   0xc   : > { %s2334_s17 = scalar_select %p309_p1, %s2207_s27, %s311_s15  }
   0xd   : > { %p2336_p5 = por %p322_p2, %p321_p0  ;;  %p2340_p6 = por %p328_p4, %p327_p3 }
   0xe   : > { %p1837_p7 = scmp.ge.s32.totalorder %s2211_s28, 1  ;;  %p389_p8 = scmp.lt.s32.totalorder %s2211_s28, 3 }
  0x10   : > { %p390_p9 = pnand %p1837_p7, %p389_p8 }
  0x11   : > { %p432_p10 = scmp.lt.s32.totalorder (!%p390_p9), %s2319_s29, 1  ;;  %vm439_vm0 = vcmask (!%p390_p9), 261120   ;;  %s2643_s0 = sld [smem:[#allocation7_spill]] (!%p390_p9)  ;;  %v468_v7 = vld [vmem:[%s2627_s3] sm:$0xff] (!%p390_p9)  ;;  %v469_v8 = vld [vmem:[%s2627_s3 + $0x8] sm:$0xff] (!%p390_p9)  ;;  %v470_v9 = vld [vmem:[%s2627_s3 + $0x10] sm:$0xff] (!%p390_p9) }
  0x12   : > { %393 = sbr.rel (%p390_p9) target bundleno = 4223 (0x107f), region = 72  ;;  %v2213_v10 = vmov (!%p390_p9), 0.0|0.0   ;;  %v2039_v11 = vpack.c.bf16 (!%p390_p9), %v469_v8, %v468_v7  ;;  %v471_v12 = vld [vmem:[%s2627_s3 + $0x18] sm:$0xff] (!%p390_p9)  ;;  %vm2214_vm1 = vmmov (!%p390_p9), 0   ;;  %v2215_v13 = vmov (!%p390_p9), 0.0   ;;  %s2644_s1 = sld [smem:[#allocation8_spill]] (!%p390_p9) }
  0x13   : > { %2038 = vmatprep.subr.bf16.mxu0 (!%p390_p9), %v2213_v10  ;;  %1929 = vmatprep.mubr.msk.f32.mxu0 (!%p390_p9), %vm2214_vm1, %v2215_v13  ;;  %554 = vst.msk [vmem:[#allocation3] sm:$0xff] (!%p390_p9), %vm439_vm0, %v2215_v13  ;;  %v2042_v14 = vpack.c.bf16 (!%p390_p9), %v471_v12, %v470_v9  ;;  %s2645_s2 = sld [smem:[#allocation9_spill]] (!%p390_p9)  ;;  %v1842_v24 = vld [vmem:[%s2628_s4] ss:$0 sm:$0xff] (!%p390_p9)  ;;  %vm552_vm2 = vcmask (!%p390_p9), 785408   ;;  %s2216_s23 = smov (!%p390_p9), 96  }
  0x14   : > { %1957 = vmatprep.subr.mxu1 (!%p390_p9), %v2215_v13  ;;  %1959 = vmatprep.mubr.msk.f32.mxu1 (!%p390_p9), %vm2214_vm1, %v2215_v13  ;;  %vm560_vm3 = vcmask (!%p390_p9), 64512   ;;  %s2218_s30 = smov (!%p390_p9), 88   ;;  %s2219_s15 = smov (!%p390_p9), 120   ;;  %v724_v43 = vld [vmem:[%s2629_s5] sm:$0xff] (!%p390_p9)  ;;  %v970_v61 = vld [vmem:[%s2629_s5 + $0x8] sm:$0xff] (!%p390_p9) }
  0x15   : > { %2040 = vmatpush3.bf16.msra.mxu0 (!%p390_p9), %v2039_v11  ;;  %s2221_s22 = smov (!%p390_p9), 80   ;;  %1958 = vmatpush3.msra.mxu1 (!%p390_p9), %v970_v61  ;;  %v1577_v61 = vld [vmem:[%s2633_s9] sm:$0xff] (!%p390_p9) }
  0x16   : > { %2041 = vmatprep.subr.bf16.mxu0 (!%p390_p9), %v2213_v10  ;;  %1967 = vmatprep.subr.mxu1 (!%p390_p9), %v2215_v13 }
  0x18   : > { %v1840_v19 = vld [vmem:[%s2644_s1] ss:$0 sm:$0xff] (!%p390_p9) }
  0x19   : > { %s433_s20 = scalar_select %p432_p10, %s2319_s29, 1  ;;  %2043 = vmatpush3.bf16.msra.mxu0 %v2042_v14  ;;  %v1841_v21 = vld [vmem:[%s2645_s2] ss:$0 sm:$0xff] }
  0x1a   : > { %1932 = vmatprep.subr.mxu0 %v2215_v13  ;;  %v723_v48 = vld [vmem:[#allocation3] sm:$0xff] }
  0x1b   : > { %s1839_s21 = sshll.u32 %s433_s20, 3  ;;  %s2225_s20 = smov 104  }
  0x1c   : > { %s435_s24 = scalar_lea.vmem %s2643_s0, %s1839_s21  ;;  %s2220_s21 = smov 56  }
  0x1d   : > { %v2351_v0 = vld [vmem:[%s435_s24] sm:$0xff]  ;;  %s2217_s24 = smov 64   ;;  %s1867_s0 = sshll.u32 %s2319_s29, 7 }
  0x1e   : > { %v440_v1 = vsel %vm439_vm0, %v2351_v0, 0.0 }
  0x1f   : > { %441 = vadd.xlane.f32.xlu0 %v440_v1 }
  0xac   : > { %v442_v2 = vpop.xlane.xlu0 %441 }
  0xad   : > { %v444_v3 = vmul.f32 0.03125, %v442_v2 }
  0xaf   : > { %v445_v4 = vsub.f32 %v2351_v0, %v444_v3 }
  0xb1   : > { %v446_v5 = vmul.f32 %v445_v4, %v445_v4 }
  0xb3   : > { %v447_v6 = vsel %vm439_vm0, %v446_v5, 0.0 }
  0xb4   : > { %448 = vadd.xlane.f32.xlu0 %v447_v6 }
 0x141   : > { %v449_v15 = vpop.xlane.xlu0 %448 }
 0x142   : > { %v450_v16 = vmul.f32 0.03125, %v449_v15 }
 0x144   : > { %v451_v17 = vadd.f32 1e-06, %v450_v16 }
 0x146   : > { %2127 = vrsqrt.f32 %v451_v17 }
 0x150   : > { %v2128_v18 = vpop.eup %2127 }
 0x151   : > { %v453_v20 = vmul.f32 %v2128_v18, %v445_v4 }
 0x153   : > { %v460_v22 = vmul.f32 %v1840_v19, %v453_v20 }
 0x155   : > { %v467_v23 = vadd.f32 %v1841_v21, %v460_v22 }
 0x157   : > { %1930 = vmatmul.mubr.msk.f32.vlgmr.msra.gmra.mrb[0].mxu0 %vm439_vm0, %v467_v23 }
 0x158   : > { %1934 = vmatprep.mubr.msk.f32.mxu0 %vm2214_vm1, %v2215_v13 }
 0x22a   : > { %v548_v25 = vpop.f32.mrb[0].mxu0 }
 0x22b   : > { %v549_v26 = vadd.f32 %v1842_v24, %v548_v25  ;;  %v1931_v27 = vpop.f32.mrb[1].mxu0 }
 0x22d   : > { %553 = vst.msk [vmem:[#allocation2] sm:$0xff] %vm552_vm2, %v549_v26  ;;  %v1216_v26 = vld [vmem:[%s2629_s5 + $0x10] sm:$0xff] }
 0x234   : > { %v2391_v28 = vld [vmem:[#allocation2] sm:$0xff] }
 0x235   : > { %558 = vrot.lane.b32.xlu1 %v2391_v28, %s2216_s23  ;;  %v2396_v30 = vmul.f32 0.35355338, %v2391_v28  ;;  %s2222_s23 = smov 112  }
 0x2a7   : > { %v559_v29 = vpop.permute.xlu1 %558 }
 0x2a8   : > { %1933 = vmatpush3.xpose.msk.msra.mxu0 %vm560_vm3, %v559_v29 }
 0x2a9   : > { %1937 = vmatprep.subr.mxu0 %v2215_v13 }
 0x2ab   : > { %1935 = vmatmul.mubr.msk.f32.vlgmr.msra.gmra.mrb[2].mxu0 %vm560_vm3, %v2396_v30 }
 0x2ac   : > { %1939 = vmatprep.mubr.msk.f32.mxu0 %vm2214_vm1, %v2215_v13 }
 0x37e   : > { %v632_v31 = vpop.f32.mrb[2].mxu0 }
 0x37f   : > { %v1936_v32 = vpop.f32.mrb[3].mxu0  ;;  %v636_v33 = vsel %vm560_vm3, %v632_v31, -inf }
 0x380   : > { %637 = vmax.xlane.f32.xlu1 %v636_v33 }
 0x40d   : > { %v638_v34 = vpop.xlane.xlu1 %637 }
 0x40e   : > { %v639_v35 = vsub.f32 %v632_v31, %v638_v34 }
 0x410   : > { %v640_v36 = vmul.f32 1.442695, %v639_v35 }
 0x412   : > { %2129 = vpow2.f32 %v640_v36 }
 0x41c   : > { %v2130_v37 = vpop.eup %2129 }
 0x41d   : > { %v642_v38 = vsel %vm560_vm3, %v2130_v37, 0.0 }
 0x41e   : > { %643 = vadd.xlane.f32.xlu0 %v642_v38 }
 0x434   : > { %647 = vrot.lane.b32.xlu0 %v2391_v28, %s2217_s24  ;;  %s2223_s24 = smov 48  }
 0x438   : > { %806 = vrot.lane.b32.xlu0 %v2391_v28, %s2218_s30  ;;  %s2224_s30 = smov 72  }
 0x43c   : > { %803 = vrot.lane.b32.xlu0 %v2396_v30, %s2219_s15  ;;  %s429_s15 = sand.u32 1, %s2203_s26  }
 0x43d   : > { %s1838_s16 = sshll.u32 %s429_s15, 3 }
 0x43e   : > { %s431_s1 = scalar_lea.vmem [#allocation4], %s1838_s16  ;;  %s2227_s16 = smov [#allocation4]  }
 0x4ab   : > { %v644_v39 = vpop.xlane.xlu0 %643 }
 0x4ac   : > { %2131 = vrcp.f32 %v644_v39  ;;  %v1462_v39 = vld [vmem:[%s2629_s5 + $0x18] sm:$0xff] }
 0x4af   : > { %v648_v40 = vpop.permute.xlu0 %647 }
 0x4b0   : > { %1938 = vmatpush3.msra.mxu0 %v648_v40 }
 0x4b1   : > { %1942 = vmatprep.subr.mxu0 %v2215_v13 }
 0x4b3   : > { %v807_v44 = vpop.permute.xlu0 %806 }
 0x4b6   : > { %v2132_v41 = vpop.eup %2131 }
 0x4b7   : > { %v646_v42 = vmul.f32 %v2132_v41, %v2130_v37  ;;  %v804_v47 = vpop.permute.xlu0 %803 }
 0x4b9   : > { %1940 = vmatmul.mubr.msk.f32.vlgmr.msra.gmra.mrb[4].mxu0 %vm560_vm3, %v646_v42 }
 0x4ba   : > { %1943 = vmatpush3.msra.mxu0 %v724_v43  ;;  %1944 = vmatprep.mubr.msk.f32.mxu0 %vm2214_vm1, %v2215_v13 }
 0x4bb   : > { %1947 = vmatprep.subr.mxu0 %v2215_v13 }
 0x58c   : > { %v719_v45 = vpop.f32.mrb[4].mxu0 }
 0x58d   : > { %v1941_v46 = vpop.f32.mrb[5].mxu0  ;;  %1945 = vmatmul.mubr.msk.f32.vlgmr.msra.gmra.mrb[6].mxu0 %vm560_vm3, %v719_v45 }
 0x58e   : > { %1948 = vmatpush3.xpose.msk.msra.mxu0 %vm560_vm3, %v807_v44  ;;  %1949 = vmatprep.mubr.msk.f32.mxu0 %vm2214_vm1, %v2215_v13 }
 0x58f   : > { %1952 = vmatprep.subr.mxu0 %v2215_v13 }
 0x591   : > { %1950 = vmatmul.mubr.msk.f32.vlgmr.msra.gmra.mrb[8].mxu0 %vm560_vm3, %v804_v47 }
 0x592   : > { %1954 = vmatprep.mubr.msk.f32.mxu0 %vm2214_vm1, %v2215_v13 }
 0x660   : > { %v794_v49 = vpop.f32.mrb[6].mxu0 }
 0x661   : > { %v798_v50 = vadd.f32 %v794_v49, %v723_v48  ;;  %v1946_v51 = vpop.f32.mrb[7].mxu0 }
 0x663   : > { %799 = vst.msk [vmem:[#allocation3] sm:$0xff] %vm439_vm0, %v798_v50 }
 0x664   : > { %v878_v52 = vpop.f32.mrb[8].mxu0 }
 0x665   : > { %v1951_v53 = vpop.f32.mrb[9].mxu0  ;;  %v882_v54 = vsel %vm560_vm3, %v878_v52, -inf }
 0x666   : > { %883 = vmax.xlane.f32.xlu1 %v882_v54  ;;  %v1860_v53 = vld [vmem:[%s2630_s6] ss:$0 sm:$0xff] }
 0x66a   : > { %v969_v17 = vld [vmem:[#allocation3] sm:$0xff] }
 0x677   : > { %893 = vrot.lane.b32.xlu1 %v2391_v28, %s2220_s21  ;;  %s2153_s21 = sshll.u32 %s2227_s16, 4  ;;  %s2154_s21 = int_to_ptr.vmem [resolvable:$false] %s2153_s21 }
 0x678   : > { %s2155_s2 = scalar_lea.vmem %s2154_s21, 256 }
 0x67b   : > { %1052 = vrot.lane.b32.xlu1 %v2391_v28, %s2221_s22  ;;  %s1775_s22 = sshll.u32 %s431_s1, 4  ;;  %s2583_s22 = int_to_ptr.vmem [resolvable:$true] %s1775_s22 }
 0x67c   : > { %s2149_s29 = scalar_lea.vmem %s2583_s22, 128  ;;  %p2156_p0 = scmp.lt.s32.totalorder %s2583_s22, %s2154_s21 }
 0x67d   : > { %p2150_p11 = scmp.ne.s32.totalorder %s2583_s22, %s2149_s29  ;;  %p2157_p1 = scmp.lt.s32.totalorder %s2155_s2, %s2149_s29 }
 0x67f   : > { %1049 = vrot.lane.b32.xlu1 %v2396_v30, %s2222_s23  ;;  %s2226_s23 = smov 40   ;;  %p2151_p12 = pnand %p2150_p11, %p2336_p5 }
 0x680   : > { %p2158_p2 = por %p2157_p1, %p2156_p0 }
 0x681   : > { %p2152_p13 = pneg %p2151_p12 }
 0x683   : > { %p2159_p3 = pnand %p2158_p2, %p2152_p13 }
 0x6f3   : > { %v884_v55 = vpop.xlane.xlu1 %883 }
 0x6f4   : > { %v885_v56 = vsub.f32 %v878_v52, %v884_v55 }
 0x6f6   : > { %v886_v57 = vmul.f32 1.442695, %v885_v56 }
 0x6f7   : > { %v894_v58 = vpop.permute.xlu1 %893 }
 0x6f8   : > { %2133 = vpow2.f32 %v886_v57  ;;  %1953 = vmatpush3.msra.mxu0 %v894_v58 }
 0x6f9   : > { %1962 = vmatprep.subr.mxu0 %v2215_v13 }
 0x6fb   : > { %v1053_v1 = vpop.permute.xlu1 %1052 }
 0x6ff   : > { %v1050_v3 = vpop.permute.xlu1 %1049 }
 0x702   : > { %v2134_v59 = vpop.eup %2133 }
 0x703   : > { %v888_v60 = vsel %vm560_vm3, %v2134_v59, 0.0 }
 0x704   : > { %889 = vadd.xlane.f32.xlu0 %v888_v60 }
 0x71a   : > { %1139 = vrot.lane.b32.xlu0 %v2391_v28, %s2223_s24 }
 0x71e   : > { %1298 = vrot.lane.b32.xlu0 %v2391_v28, %s2224_s30  ;;  %s2581_s30 = scalar_lea.hbm %s2637_s13, %s1867_s0 }
 0x791   : > { %v890_v62 = vpop.xlane.xlu0 %889 }
 0x792   : > { %2135 = vrcp.f32 %v890_v62 }
 0x795   : > { %v1140_v5 = vpop.permute.xlu0 %1139 }
 0x799   : > { %v1299_v21 = vpop.permute.xlu0 %1298 }
 0x79c   : > { %v2136_v63 = vpop.eup %2135 }
 0x79d   : > { %v892_v2 = vmul.f32 %v2136_v63, %v2134_v59  ;;  %v1579_v63 = vld [vmem:[%s2633_s9 + $0x10] sm:$0xff] }
 0x79f   : > { %1955 = vmatmul.mubr.msk.f32.vlgmr.msra.gmra.mrb[10].mxu0 %vm560_vm3, %v892_v2 }
 0x7a0   : > { %1963 = vmatpush3.xpose.msk.msra.mxu0 %vm560_vm3, %v1053_v1  ;;  %1964 = vmatprep.mubr.msk.f32.mxu0 %vm2214_vm1, %v2215_v13  ;;  %v1580_v1 = vld [vmem:[%s2633_s9 + $0x18] sm:$0xff] }
 0x7a1   : > { %1972 = vmatprep.subr.mxu0 %v2215_v13  ;;  %v2048_v2 = vpack.c.bf16 %v1580_v1, %v1579_v63 }
 0x7a3   : > { %1965 = vmatmul.mubr.msk.f32.vlgmr.msra.gmra.mrb[12].mxu0 %vm560_vm3, %v1050_v3  ;;  %v1666_v3 = vld [vmem:[%s2635_s11] sm:$0xff] }
 0x7a4   : > { %1974 = vmatprep.mubr.msk.f32.mxu0 %vm2214_vm1, %v2215_v13  ;;  %1973 = vmatpush3.msra.mxu0 %v1216_v26  ;;  %v1674_v26 = vld [vmem:[%s2635_s11 + $0x40] sm:$0xff] }
 0x7a5   : > { %1982 = vmatprep.subr.mxu0 %v2215_v13 }
 0x872   : > { %v965_v4 = vpop.f32.mrb[10].mxu0 }
 0x873   : > { %v1956_v6 = vpop.f32.mrb[11].mxu0  ;;  %1960 = vmatmul.mubr.msk.f32.vlgmr.msra.gmra.mrb[0].mxu1 %vm560_vm3, %v965_v4  ;;  %v1667_v4 = vld [vmem:[%s2635_s11 + $0x8] sm:$0xff] }
 0x874   : > { %1968 = vmatpush3.msra.mxu1 %v1140_v5  ;;  %1969 = vmatprep.mubr.msk.f32.mxu1 %vm2214_vm1, %v2215_v13  ;;  %v1668_v5 = vld [vmem:[%s2635_s11 + $0x10] sm:$0xff]  ;;  %v2051_v6 = vpack.c.bf16 %v1667_v4, %v1666_v3 }
 0x875   : > { %1977 = vmatprep.subr.mxu1 %v2215_v13 }
 0x876   : > { %v1124_v7 = vpop.f32.mrb[12].mxu0 }
 0x877   : > { %v1966_v8 = vpop.f32.mrb[13].mxu0  ;;  %v1128_v9 = vsel %vm560_vm3, %v1124_v7, -inf }
 0x878   : > { %1129 = vmax.xlane.f32.xlu1 %v1128_v9  ;;  %v1670_v9 = vld [vmem:[%s2635_s11 + $0x20] sm:$0xff] }
 0x905   : > { %v1130_v11 = vpop.xlane.xlu1 %1129 }
 0x906   : > { %v1131_v12 = vsub.f32 %v1124_v7, %v1130_v11  ;;  %v1669_v7 = vld [vmem:[%s2635_s11 + $0x18] sm:$0xff]  ;;  %v1671_v11 = vld [vmem:[%s2635_s11 + $0x28] sm:$0xff] }
 0x907   : > { %v2054_v8 = vpack.c.bf16 %v1669_v7, %v1668_v5 }
 0x908   : > { %v1132_v14 = vmul.f32 1.442695, %v1131_v12  ;;  %v2057_v12 = vpack.c.bf16 %v1671_v11, %v1670_v9 }
 0x90a   : > { %2137 = vpow2.f32 %v1132_v14 }
 0x914   : > { %v2138_v15 = vpop.eup %2137 }
 0x915   : > { %v1134_v16 = vsel %vm560_vm3, %v2138_v15, 0.0 }
 0x916   : > { %1135 = vadd.xlane.f32.xlu0 %v1134_v16 }
 0x92c   : > { %1295 = vrot.lane.b32.xlu0 %v2396_v30, %s2225_s20  ;;  %s1762_s20 = scalar_lea.sflag [#allocation5], %s429_s15 }
 0x946   : > { %v1040_v18 = vpop.f32.mrb[0].mxu1 }
 0x947   : > { %v1044_v19 = vadd.f32 %v1040_v18, %v969_v17  ;;  %v1961_v20 = vpop.f32.mrb[1].mxu1  ;;  %v1861_v18 = vld [vmem:[%s2631_s7] ss:$0 sm:$0xff] }
 0x948   : > { %v1862_v20 = vld [vmem:[%s2632_s8] ss:$0 sm:$0xff] }
 0x949   : > { %1045 = vst.msk [vmem:[#allocation3] sm:$0xff] %vm439_vm0, %v1044_v19 }
 0x9a3   : > { %v1136_v22 = vpop.xlane.xlu0 %1135 }
 0x9a4   : > { %2139 = vrcp.f32 %v1136_v22 }
 0x9a7   : > { %v1296_v25 = vpop.permute.xlu0 %1295 }
 0x9ae   : > { %v2140_v23 = vpop.eup %2139 }
 0x9af   : > { %v1138_v24 = vmul.f32 %v2140_v23, %v2138_v15  ;;  %v1672_v23 = vld [vmem:[%s2635_s11 + $0x30] sm:$0xff] }
 0x9b1   : > { %1970 = vmatmul.mubr.msk.f32.vlgmr.msra.gmra.mrb[2].mxu1 %vm560_vm3, %v1138_v24  ;;  %v1673_v24 = vld [vmem:[%s2635_s11 + $0x38] sm:$0xff] }
 0x9b2   : > { %1978 = vmatpush3.xpose.msk.msra.mxu1 %vm560_vm3, %v1299_v21  ;;  %1979 = vmatprep.mubr.msk.f32.mxu1 %vm2214_vm1, %v2215_v13 }
 0x9b3   : > { %1987 = vmatprep.subr.mxu1 %v2215_v13 }
 0x9b5   : > { %1980 = vmatmul.mubr.msk.f32.vlgmr.msra.gmra.mrb[4].mxu1 %vm560_vm3, %v1296_v25  ;;  %v2060_v25 = vpack.c.bf16 %v1673_v24, %v1672_v23 }
 0x9b6   : > { %1989 = vmatprep.mubr.msk.f32.mxu1 %vm2214_vm1, %v2215_v13  ;;  %1988 = vmatpush3.msra.mxu1 %v1462_v39  ;;  %v1863_v39 = vld [vmem:[%s2634_s10] ss:$0 sm:$0xff] }
 0x9b7   : > { %2050 = vmatprep.subr.bf16.mxu1 %v2213_v10 }
 0xa84   : > { %v1211_v27 = vpop.f32.mrb[2].mxu1 }
 0xa85   : > { %v1971_v29 = vpop.f32.mrb[3].mxu1  ;;  %1975 = vmatmul.mubr.msk.f32.vlgmr.msra.gmra.mrb[14].mxu0 %vm560_vm3, %v1211_v27  ;;  %v1675_v27 = vld [vmem:[%s2635_s11 + $0x48] sm:$0xff] }
 0xa86   : > { %1984 = vmatprep.mubr.msk.f32.mxu0 %vm2214_vm1, %v2215_v13  ;;  %v2063_v29 = vpack.c.bf16 %v1675_v27, %v1674_v26 }
 0xa88   : > { %v1370_v30 = vpop.f32.mrb[4].mxu1 }
 0xa89   : > { %v1981_v31 = vpop.f32.mrb[5].mxu1  ;;  %v1374_v32 = vsel %vm560_vm3, %v1370_v30, -inf }
 0xa8a   : > { %1375 = vmax.xlane.f32.xlu1 %v1374_v32  ;;  %v1677_v31 = vld [vmem:[%s2635_s11 + $0x58] sm:$0xff] }
 0xa9b   : > { %1385 = vrot.lane.b32.xlu1 %v2391_v28, %s2226_s23  ;;  %v1215_v28 = vld [vmem:[#allocation3] sm:$0xff] }
 0xb17   : > { %v1376_v33 = vpop.xlane.xlu1 %1375 }
 0xb18   : > { %v1377_v34 = vsub.f32 %v1370_v30, %v1376_v33  ;;  %v1676_v30 = vld [vmem:[%s2635_s11 + $0x50] sm:$0xff]  ;;  %v1678_v33 = vld [vmem:[%s2635_s11 + $0x60] sm:$0xff] }
 0xb19   : > { %v2066_v32 = vpack.c.bf16 %v1677_v31, %v1676_v30 }
 0xb1a   : > { %v1378_v35 = vmul.f32 1.442695, %v1377_v34  ;;  %v1679_v34 = vld [vmem:[%s2635_s11 + $0x68] sm:$0xff] }
 0xb1b   : > { %v1386_v36 = vpop.permute.xlu1 %1385 }
 0xb1c   : > { %2141 = vpow2.f32 %v1378_v35  ;;  %1983 = vmatpush3.msra.mxu0 %v1386_v36  ;;  %v2069_v35 = vpack.c.bf16 %v1679_v34, %v1678_v33  ;;  %v1680_v36 = vld [vmem:[%s2635_s11 + $0x70] sm:$0xff] }
 0xb1d   : > { %2044 = vmatprep.subr.bf16.mxu0 %v2213_v10 }
 0xb26   : > { %v2142_v37 = vpop.eup %2141 }
 0xb27   : > { %v1380_v38 = vsel %vm560_vm3, %v2142_v37, 0.0 }
 0xb28   : > { %1381 = vadd.xlane.f32.xlu0 %v1380_v38 }
 0xb58   : > { %v1286_v40 = vpop.f32.mrb[14].mxu0 }
 0xb59   : > { %v1290_v41 = vadd.f32 %v1286_v40, %v1215_v28  ;;  %v1976_v42 = vpop.f32.mrb[15].mxu0 }
 0xb5b   : > { %1291 = vst.msk [vmem:[#allocation3] sm:$0xff] %vm439_vm0, %v1290_v41 }
 0xb62   : > { %v1461_v48 = vld [vmem:[#allocation3] sm:$0xff] }
 0xbb5   : > { %v1382_v43 = vpop.xlane.xlu0 %1381 }
 0xbb6   : > { %2143 = vrcp.f32 %v1382_v43 }
 0xbc0   : > { %v2144_v44 = vpop.eup %2143 }
 0xbc1   : > { %v1384_v45 = vmul.f32 %v2144_v44, %v2142_v37  ;;  %v1681_v37 = vld [vmem:[%s2635_s11 + $0x78] sm:$0xff] }
 0xbc2   : > { %v2072_v38 = vpack.c.bf16 %v1681_v37, %v1680_v36 }
 0xbc3   : > { %1985 = vmatmul.mubr.msk.f32.vlgmr.msra.gmra.mrb[16].mxu0 %vm560_vm3, %v1384_v45 }
 0xbc4   : > { %2000 = vmatprep.mubr.msk.f32.mxu0 %vm2214_vm1, %v2215_v13 }
 0xc96   : > { %v1457_v46 = vpop.f32.mrb[16].mxu0 }
 0xc97   : > { %v1986_v47 = vpop.f32.mrb[17].mxu0  ;;  %1990 = vmatmul.mubr.msk.f32.vlgmr.msra.gmra.mrb[6].mxu1 %vm560_vm3, %v1457_v46  ;;  %v1865_v46 = vld [vmem:[%s2636_s12] ss:$0 sm:$0xff] }
 0xc98   : > { %2035 = vmatprep.mubr.msk.f32.mxu1 %vm2214_vm1, %v2215_v13  ;;  %2052 = vmatpush3.bf16.msra.mxu1 %v2051_v6 }
 0xc99   : > { %2053 = vmatprep.subr.bf16.mxu1 %v2213_v10 }
 0xc9c   : > { %2055 = vmatpush3.bf16.msra.mxu1 %v2054_v8 }
 0xc9d   : > { %2056 = vmatprep.subr.bf16.mxu1 %v2213_v10 }
 0xca0   : > { %2058 = vmatpush3.bf16.msra.mxu1 %v2057_v12 }
 0xca1   : > { %2059 = vmatprep.subr.bf16.mxu1 %v2213_v10 }
 0xca4   : > { %2061 = vmatpush3.bf16.msra.mxu1 %v2060_v25 }
 0xca5   : > { %2062 = vmatprep.subr.bf16.mxu1 %v2213_v10 }
 0xca8   : > { %2064 = vmatpush3.bf16.msra.mxu1 %v2063_v29 }
 0xca9   : > { %2065 = vmatprep.subr.bf16.mxu1 %v2213_v10 }
 0xcac   : > { %2067 = vmatpush3.bf16.msra.mxu1 %v2066_v32 }
 0xcad   : > { %2068 = vmatprep.subr.bf16.mxu1 %v2213_v10 }
 0xcb0   : > { %2070 = vmatpush3.bf16.msra.mxu1 %v2069_v35 }
 0xcb1   : > { %2071 = vmatprep.subr.bf16.mxu1 %v2213_v10 }
 0xcb4   : > { %2073 = vmatpush3.bf16.msra.mxu1 %v2072_v38 }
 0xd6a   : > { %v1532_v49 = vpop.f32.mrb[6].mxu1 }
 0xd6b   : > { %v1536_v50 = vadd.f32 %v1532_v49, %v1461_v48  ;;  %v1991_v51 = vpop.f32.mrb[7].mxu1 }
 0xd6d   : > { %1537 = vst.msk [vmem:[#allocation3] sm:$0xff] %vm439_vm0, %v1536_v50 }
 0xd74   : > { %v1538_v52 = vld [vmem:[#allocation3] sm:$0xff] }
 0xd75   : > { %v1539_v54 = vadd.f32 %v1538_v52, %v2351_v0  ;;  %v1578_v0 = vld [vmem:[%s2633_s9 + $0x8] sm:$0xff] }
 0xd76   : > { %v2045_v62 = vpack.c.bf16 %v1578_v0, %v1577_v61 }
 0xd77   : > { %v2488_v55 = vadd.f32 %v1860_v53, %v1539_v54 }
 0xd78   : > { %2046 = vmatpush3.bf16.msra.mxu0 %v2045_v62 }
 0xd79   : > { %v1550_v56 = vsel %vm439_vm0, %v2488_v55, 0.0  ;;  %2047 = vmatprep.subr.bf16.mxu0 %v2213_v10 }
 0xd7a   : > { %1551 = vadd.xlane.f32.xlu1 %v1550_v56 }
 0xd7c   : > { %2049 = vmatpush3.bf16.msra.mxu0 %v2048_v2 }
 0xe07   : > { %v1552_v13 = vpop.xlane.xlu1 %1551 }
 0xe08   : > { %v1553_v57 = vmul.f32 0.03125, %v1552_v13 }
 0xe0a   : > { %v1554_v58 = vsub.f32 %v2488_v55, %v1553_v57 }
 0xe0c   : > { %v1555_v59 = vmul.f32 %v1554_v58, %v1554_v58 }
 0xe0e   : > { %v1556_v60 = vsel %vm439_vm0, %v1555_v59, 0.0 }
 0xe0f   : > { %1557 = vadd.xlane.f32.xlu0 %v1556_v60 }
 0xe9c   : > { %v1558_v14 = vpop.xlane.xlu0 %1557 }
 0xe9d   : > { %v1559_v15 = vmul.f32 0.03125, %v1558_v14 }
 0xe9f   : > { %v1560_v16 = vadd.f32 1e-06, %v1559_v15 }
 0xea1   : > { %2145 = vrsqrt.f32 %v1560_v16 }
 0xeab   : > { %v2146_v17 = vpop.eup %2145 }
 0xeac   : > { %v1562_v19 = vmul.f32 %v2146_v17, %v1554_v58 }
 0xeae   : > { %v1569_v21 = vmul.f32 %v1861_v18, %v1562_v19 }
 0xeb0   : > { %v1576_v22 = vadd.f32 %v1862_v20, %v1569_v21 }
 0xeb2   : > { %2001 = vmatmul.mubr.msk.f32.vlgmr.msra.gmra.mrb[18].mxu0 %vm439_vm0, %v1576_v22 }
 0xf85   : > { %v1657_v28 = vpop.f32.mrb[18].mxu0 }
 0xf86   : > { %v1658_v40 = vadd.f32 %v1863_v39, %v1657_v28  ;;  %v2002_v41 = vpop.f32.mrb[19].mxu0 }
 0xf88   : > { %v1662_v10 = vmul.f32 0.70710677, %v1658_v40  ;;  %v1661_v43 = vmul.f32 0.5, %v1658_v40 }
 0xf8a   : > { %2147 = verf.f32 %v1662_v10 }
 0xf94   : > { %v2148_v42 = vpop.eup %2147 }
 0xf95   : > { %v1664_v44 = vadd.f32 1.0, %v2148_v42 }
 0xf97   : > { %v1665_v45 = vmul.f32 %v1664_v44, %v1661_v43 }
 0xf99   : > { %2036 = vmatmul.mubr.f32.vlgmr.msra.gmra.mrb[8].mxu1 %v1665_v45 }
0x106c   : > { %v1755_v47 = vpop.f32.mrb[8].mxu1 }
0x106d   : > { %v1756_v48 = vadd.f32 %v1865_v46, %v1755_v47  ;;  %v2037_v49 = vpop.f32.mrb[9].mxu1 }
0x106f   : > { %v1759_v50 = vadd.f32 %v1756_v48, %v2488_v55 }
0x1071   : > { %1760 = vst.msk [vmem:[%s431_s1] sm:$0xff] %vm439_vm0, %v1759_v50 }
0x1072   : > { %2162 = shalt.err (!%p2159_p3)
}
0x1073   : > { %s2163_s15 = scalar_lea.hbm %s2581_s30, 128  ;;  %s2167_s23 = scalar_lea.hbm %s2637_s13, 256 }
0x1074   : > { %p2164_p4 = scmp.ne.s32.totalorder %s2581_s30, %s2163_s15  ;;  %p2168_p9 = scmp.lt.u32.totalorder %s2581_s30, %s2637_s13 }
0x1075   : > { %p2169_p10 = scmp.lt.u32.totalorder %s2167_s23, %s2163_s15  ;;  %p2171_p12 = scmp.lt.u32.totalorder %s2163_s15, %s2581_s30 }
0x1076   : > { %p2165_p7 = pnand %p2164_p4, %p2336_p5 }
0x1077   : > { %p2170_p11 = por %p2169_p10, %p2168_p9 }
0x1078   : > { %p2166_p8 = pneg %p2165_p7 }
0x1079   : > { %p2172_p13 = por %p2171_p12, %p2170_p11 }
0x107b   : > { %p2173_p0 = pnand %p2172_p13, %p2166_p8 }
0x107d   : > { %2176 = shalt.err (!%p2173_p0)
}
0x107e   : > { %2074 = dma.vmem_to_hbm [thread:$0]  (%p2336_p5), %s2583_s22, 128, %s2581_s30, %s1762_s20  }
0x107f PF: > { %p2080_p1 = scmp.ge.s32.totalorder %s2211_s28, 2  ;;  %s1787_s2 = sand.u32 1, %s2199_s25  }
0x1080   : > { %s1788_s29 = scalar_lea.sflag [#allocation5], %s1787_s2 }
0x1081   : > { %p2077_p2 = pnand %p2080_p1, %p2340_p6 }
0x1083   : > { %2194 = dma.done.wait (!%p2077_p2), %s1788_s29, 128  }
0x1084   : > { %2196 = vsyncadd (!%p2077_p2), %s1788_s29, 4294967168  ;;  %p23_p3 = scmp.ge.s32.totalorder %s2323_s14, 4   ;;  %s2646_s25 = smov %s2203_s26 }
0x1085   : > { %s2647_s26 = smov %s2207_s27  ;;  %s2648_s27 = smov %s2334_s17 }
0x1086   : > { %s2649_s28 = smov %s2323_s14  ;;  %25 = sbr.rel (!%p23_p3) target bundleno = 7 (0x7), region = 107 }
0x108d   :  { %1793 = vsyncpa [#allocation5], 1 }
0x108e   :  { %1795 = vsyncpa [#allocation5 + $0x1], 1 }

</bundles_post_ra>
